<compile_context>
chip_gen: v6e
topology: v6e:2x2x1
jax: 0.10.0
libtpu: 0.0.40
codegen_flags: <defaults>
</compile_context>

<pallas_src>
import jax
import jax.numpy as jnp
from jax.experimental import pallas as pl
from jax.experimental.pallas import tpu as pltpu

EPS = 1e-5
_VMEM_LIMIT = 32 * 1024 * 1024  # explicit scoped-VMEM cap (safe on v5e/v6e/v7x)


def _stats_kernel(x_ref, stats_ref):
    """Accumulate per-column [sum; sum(x*x)] over row tiles into stats_ref."""
    i = pl.program_id(0)

    @pl.when(i == 0)
    def _():
        stats_ref[...] = jnp.zeros_like(stats_ref)

    x = x_ref[...].astype(jnp.float32)                  # (tile, Cf)
    s = jnp.sum(x, axis=0, keepdims=True)               # (1, Cf)  full-f32 reduce
    sq = jnp.sum(x * x, axis=0, keepdims=True)          # (1, Cf)
    stats_ref[...] += jnp.concatenate([s, sq], axis=0)  # (2, Cf)


def _normalize_kernel(scale_ref, shift_ref, x_ref, o_ref):
    """y = x * scale + shift  (scale/shift already fold gamma, beta, mean, var)."""
    x = x_ref[...].astype(jnp.float32)
    o_ref[...] = (x * scale_ref[...] + shift_ref[...]).astype(o_ref.dtype)


def pbatchnorm1d(x, gamma, beta):
    """x: (B, L, C); gamma, beta: (C,). Returns (B, L, C)."""
    B, L, C = x.shape
    N = B * L

    # ---- lane-dense fold for small C: (N, C) -> (Np, k*C), pure reshape ----
    if C < 128 and 128 % C == 0:
        k = 128 // C
    else:
        k = 1
    Cf = k * C

    # ---- tile size: ~1 MiB fp32 per tile buffer, 8-row aligned ----
    rows_raw = pl.cdiv(N, k)
    target = (1 << 20) // (Cf * 4)
    tile = int(max(256, min(2048, target)))
    tile = max(8, (tile // 8) * 8)
    tile = min(tile, rows_raw)
    num_tiles = pl.cdiv(rows_raw, tile)
    Np = num_tiles * tile
    N_padded = Np * k

    x2d = x.reshape(N, C)
    if N_padded != N:
        # zero rows contribute nothing to sum/sumsq; sliced off after pass 2
        x2d = jnp.pad(x2d, ((0, N_padded - N), (0, 0)))
    xf = x2d.reshape(Np, Cf)

    # ---- Pass 1: streaming per-column sum / sum-of-squares (fp32) ----
    stats = pl.pallas_call(
        _stats_kernel,
        out_shape=jax.ShapeDtypeStruct((2, Cf), jnp.float32),
        grid_spec=pltpu.PrefetchScalarGridSpec(
            num_scalar_prefetch=0,
            grid=(num_tiles,),
            in_specs=[pl.BlockSpec((tile, Cf), lambda i: (i, 0))],
            out_specs=pl.BlockSpec((2, Cf), lambda i: (0, 0)),
        ),
        compiler_params=pltpu.CompilerParams(
            dimension_semantics=("arbitrary",),
            vmem_limit_bytes=_VMEM_LIMIT,
        ),
    )(xf)

    # ---- Tiny finalize in plain JAX (arrays of size C / k*C; negligible) ----
    col_sum = stats[0].reshape(k, C).sum(axis=0)
    col_sumsq = stats[1].reshape(k, C).sum(axis=0)
    n = jnp.float32(N)
    mean = col_sum / n
    var = jnp.maximum(col_sumsq / n - mean * mean, 0.0)   # biased var, guarded
    inv_std = 1.0 / jnp.sqrt(var + EPS)
    scale = gamma.astype(jnp.float32) * inv_std
    shift = beta.astype(jnp.float32) - mean * scale
    scale_f = jnp.tile(scale, k).reshape(1, Cf)
    shift_f = jnp.tile(shift, k).reshape(1, Cf)

    # ---- Pass 2: streaming normalize; row tiles are independent (parallel) ----
    outf = pl.pallas_call(
        _normalize_kernel,
        out_shape=jax.ShapeDtypeStruct((Np, Cf), x.dtype),
        grid_spec=pltpu.PrefetchScalarGridSpec(
            num_scalar_prefetch=0,
            grid=(num_tiles,),
            in_specs=[
                pl.BlockSpec((1, Cf), lambda i: (0, 0)),
                pl.BlockSpec((1, Cf), lambda i: (0, 0)),
                pl.BlockSpec((tile, Cf), lambda i: (i, 0)),
            ],
            out_specs=pl.BlockSpec((tile, Cf), lambda i: (i, 0)),
        ),
        compiler_params=pltpu.CompilerParams(
            dimension_semantics=("parallel",),
            vmem_limit_bytes=_VMEM_LIMIT,
        ),
    )(scale_f, shift_f, xf)

    out2d = outf.reshape(N_padded, C)[:N]
    return out2d.reshape(B, L, C)


def pbatchnorm1d_ref(x, gamma, beta):
    # Pure-JAX reference (PyTorch BatchNorm1d, training mode, biased variance).
    xf = x.astype(jnp.float32)
    mean = jnp.mean(xf, axis=(0, 1), keepdims=True)
    var = jnp.mean((xf - mean) ** 2, axis=(0, 1), keepdims=True)
    y = (xf - mean) / jnp.sqrt(var + EPS) * gamma + beta
    return y.astype(x.dtype)


if __name__ == "__main__":
    key = jax.random.PRNGKey(0)

    # Case 1: (batch=2, seq=8, dim=32) — exercises the lane-dense fold (k=4).
    B, L, DIM = 2, 8, 32
    kx, kg, kb, key = jax.random.split(key, 4)
    x = jax.random.normal(kx, (B, L, DIM), dtype=jnp.float32)
    gamma = jax.random.uniform(kg, (DIM,), dtype=jnp.float32, minval=0.5, maxval=1.5)
    beta = jax.random.normal(kb, (DIM,), dtype=jnp.float32) * 0.1

    out = jax.block_until_ready(pbatchnorm1d(x, gamma, beta))
    ref = pbatchnorm1d_ref(x, gamma, beta)
    assert out.shape == (B, L, DIM)
    assert jnp.allclose(out, ref, atol=1e-5, rtol=1e-5), "mismatch vs reference (case 1)"

    # Case 2: (batch=2, seq=7, dim=32) — exercises the row-padding path.
    B2, L2 = 2, 7
    kx2, _ = jax.random.split(key)
    x2 = jax.random.normal(kx2, (B2, L2, DIM), dtype=jnp.float32)
    out2 = jax.block_until_ready(pbatchnorm1d(x2, gamma, beta))
    ref2 = pbatchnorm1d_ref(x2, gamma, beta)
    assert out2.shape == (B2, L2, DIM)
    assert jnp.allclose(out2, ref2, atol=1e-5, rtol=1e-5), "mismatch vs reference (case 2)"

    print("KERNEL_OK")
</pallas_src>

<mosaic_0001>
module attributes {stable_mosaic.version = 11 : i64} {
  func.func @_stats_kernel(%arg0: i32, %arg1: memref<4x128xf32, #tpu.memory_space<vmem>>, %arg2: memref<2x128xf32, #tpu.memory_space<vmem>>) attributes {dimension_semantics = [#tpu.dimension_semantics<arbitrary>], iteration_bounds = array<i64: 1>, scalar_prefetch = 0 : i64, scratch_operands = 0 : i64, tpu.core_type = #tpu.core_type<tc>, window_params = [{transform_indices = @transform_0, window_bounds = array<i64: 4, 128>}, {pipeline_mode = #tpu.pipeline_mode<synchronous>, transform_indices = @transform_1, window_bounds = array<i64: 2, 128>}]} {
    %c0_i32 = arith.constant 0 : i32
    %0 = arith.cmpi eq, %arg0, %c0_i32 : i32
    %1 = arith.extui %0 : i1 to i32
    %c0_i32_0 = arith.constant 0 : i32
    %2 = arith.cmpi ne, %1, %c0_i32_0 : i32
    scf.if %2 {
      %cst_7 = arith.constant 0.000000e+00 : f32
      %13 = vector.broadcast %cst_7 : f32 to vector<2x128xf32>
      %c0_8 = arith.constant 0 : index
      %c0_9 = arith.constant 0 : index
      %14 = vector.load %arg2[%c0_8, %c0_9] : memref<2x128xf32, #tpu.memory_space<vmem>>, vector<2x128xf32>
      tpu.vector_store %arg2[%c0_8, %c0_9], %13 {strides = array<i32>} : memref<2x128xf32, #tpu.memory_space<vmem>>, vector<2x128xf32>,
    } else {
    }
    %c0 = arith.constant 0 : index
    %c0_1 = arith.constant 0 : index
    %3 = vector.load %arg1[%c0, %c0_1] : memref<4x128xf32, #tpu.memory_space<vmem>>, vector<4x128xf32>
    %cst = arith.constant dense<0.000000e+00> : vector<128xf32>
    %4 = vector.multi_reduction <add>, %3, %cst [0] : vector<4x128xf32> to vector<128xf32>
    %5 = vector.shape_cast %4 : vector<128xf32> to vector<1x128xf32>
    %6 = arith.mulf %3, %3 : vector<4x128xf32>
    %cst_2 = arith.constant dense<0.000000e+00> : vector<128xf32>
    %7 = vector.multi_reduction <add>, %6, %cst_2 [0] : vector<4x128xf32> to vector<128xf32>
    %8 = vector.shape_cast %7 : vector<128xf32> to vector<1x128xf32>
    %c0_3 = arith.constant 0 : index
    %c0_4 = arith.constant 0 : index
    %9 = vector.load %arg2[%c0_3, %c0_4] : memref<2x128xf32, #tpu.memory_space<vmem>>, vector<2x128xf32>
    %10 = tpu.concatenate %5, %8 in 0 : vector<1x128xf32>, vector<1x128xf32> -> vector<2x128xf32>
    %11 = arith.addf %9, %10 : vector<2x128xf32>
    %c0_5 = arith.constant 0 : index
    %c0_6 = arith.constant 0 : index
    %12 = vector.load %arg2[%c0_5, %c0_6] : memref<2x128xf32, #tpu.memory_space<vmem>>, vector<2x128xf32>
    tpu.vector_store %arg2[%c0_5, %c0_6], %11 {strides = array<i32>} : memref<2x128xf32, #tpu.memory_space<vmem>>, vector<2x128xf32>,
    return
  }
  func.func @transform_0(%arg0: i32) -> (i32, i32) {
    %c0_i32 = arith.constant 0 : i32
    %c0_i32_0 = arith.constant 0 : i32
    return %arg0, %c0_i32 : i32, i32
  }
  func.func @transform_1(%arg0: i32) -> (i32, i32) {
    %c0_i32 = arith.constant 0 : i32
    %c0_i32_0 = arith.constant 0 : i32
    %c0_i32_1 = arith.constant 0 : i32
    return %c0_i32, %c0_i32_0 : i32, i32
  }
}

</mosaic_0001>

<bundles_post_ra>
// kernel: tpu_custom_call.1
= control target key start
LH: loop header
LB: loop body
LE: loop exit
PB: predicated region body
PF: predicated region fallthrough
CT: control target
= control target key end

     0   :  { %6 = vsyncpa [#allocation3], 0  ;;  %s129_s0 = inlined_call_operand.hbm [shape: f32[4,128], index: 0, kind: input, shape index: {}]   ;;  %s130_s1 = inlined_call_operand.hbm [shape: f32[2,128], index: 1, kind: output, shape index: {}]  }
   0x1   :  { %7 = vsyncpa [#allocation4], 0  ;;  %s110_s6 = smov [#allocation2]  }
   0x2   :  { %s14_s7 = sshll.u32 %s110_s6, 4  ;;  %s15_s7 = int_to_ptr.vmem [resolvable:$true] %s14_s7 }
   0x3   :  { %s74_s8 = scalar_lea.vmem %s15_s7, 64  ;;  %p79_p1 = scmp.lt.s32.totalorder %s15_s7, %s15_s7 }
   0x4   :  { %p75_p0 = scmp.ne.s32.totalorder %s15_s7, %s74_s8  ;;  %p80_p2 = scmp.lt.s32.totalorder %s74_s8, %s74_s8 }
   0x6   :  { %p81_p3 = por %p80_p2, %p79_p1 }
   0x8   :  { %p82_p4 = pnand %p81_p3, %p75_p0 }
   0xa   :  { %85 = shalt.err (!%p82_p4)
}
   0xb   :  { %17 = dma.hbm_to_vmem [thread:$0]  %s129_s0, 64, %s15_s7, [#allocation3]  }
   0xc   :  { %106 = dma.done.wait [#allocation3], 64  }
   0xd   :  { %107 = vsyncadd [#allocation3], 4294967232  ;;  %v111_v0 = vmov 0.0   ;;  %vm27_vm0 = vcmask 1043456   ;;  %v26_v1 = vld [vmem:[#allocation2] sm:$0xf] }
   0xe   :  { %25 = vst [vmem:[#allocation5] sm:$0x3] %v111_v0  ;;  %v28_v2 = vsel %vm27_vm0, %v26_v1, 0.0  ;;  %v35_v3 = vmul.f32 %v26_v1, %v26_v1  ;;  %vm44_vm1 = vcmask 1040384   ;;  %s112_s0 = smov [#allocation5]  }
   0xf   :  { %v29_v4 = vrot.slane %v28_v2, 4  ;;  %s54_s11 = sshll.u32 %s112_s0, 4  ;;  %s55_s11 = int_to_ptr.vmem [resolvable:$true] %s54_s11 }
  0x10   :  { %v36_v5 = vsel %vm27_vm0, %v35_v3, 0.0  ;;  %s86_s12 = scalar_lea.vmem %s55_s11, 32  ;;  %p91_p6 = scmp.lt.s32.totalorder %s55_s11, %s55_s11 }
  0x11   :  { %v30_v6 = vadd.f32 %v29_v4, %v28_v2  ;;  %v37_v7 = vrot.slane %v36_v5, 4  ;;  %p87_p5 = scmp.ne.s32.totalorder %s55_s11, %s86_s12  ;;  %p92_p7 = scmp.lt.s32.totalorder %s86_s12, %s86_s12 }
  0x13   :  { %v31_v8 = vrot.slane %v30_v6, 2  ;;  %v38_v9 = vadd.f32 %v37_v7, %v36_v5  ;;  %p93_p8 = por %p92_p7, %p91_p6 }
  0x15   :  { %v32_v10 = vadd.f32 %v31_v8, %v30_v6  ;;  %v39_v11 = vrot.slane %v38_v9, 2  ;;  %v43_v17 = vld [vmem:[#allocation5] sm:$0x3]  ;;  %p94_p9 = pnand %p93_p8, %p87_p5 }
  0x17   :  { %v33_v12 = vrot.slane %v32_v10, 1  ;;  %v40_v13 = vadd.f32 %v39_v11, %v38_v9 }
  0x19   :  { %v34_v14 = vadd.f32 %v33_v12, %v32_v10  ;;  %v41_v15 = vrot.slane %v40_v13, 1 }
  0x1b   :  { %v42_v16 = vadd.f32 %v41_v15, %v40_v13 }
  0x1d   :  { %v45_v18 = vsel %vm44_vm1, %v34_v14, %v42_v16 }
  0x1e   :  { %v46_v19 = vadd.f32 %v45_v18, %v43_v17 }
  0x20   :  { %47 = vst [vmem:[#allocation5] sm:$0x3] %v46_v19 }
  0x21   :  { %97 = shalt.err (!%p94_p9)
}
  0x22   :  { %57 = dma.vmem_to_hbm [thread:$0]  %s55_s11, 32, %s130_s1, [#allocation4]  }
  0x23   :  { %108 = dma.done.wait [#allocation4], 32  }
  0x24   :  { %109 = vsyncadd [#allocation4], 4294967264 }
  0x25   :  { %61 = vsyncpa [#allocation3], 1 }
  0x26   :  { %62 = vsyncpa [#allocation4], 1 }

</bundles_post_ra>
